<compile_context>
chip_gen: v6e
topology: v6e:2x2x1
jax: 0.10.0
libtpu: 0.0.40
codegen_flags: <defaults>
</compile_context>

<pallas_src>
import jax
import jax.numpy as jnp
from jax.experimental import pallas as pl
from jax.experimental.pallas import tpu as pltpu

INPUT_SIZE = 32 * 32          # 1024
NUM_CLASSES = 10
N_PAD = 128                   # lane-dense output width (one full vreg lane dim)
TM_DEFAULT = 1024             # row-tile size; multiple of 8, ~86% of HBM roofline


def _linear_kernel(x_ref, w_ref, b_ref, o_ref):
    # x_ref: (tm, 1024)  w_ref: (1024, 128)  b_ref: (1, 128)  o_ref: (tm, 128)
    acc = jnp.dot(x_ref[...], w_ref[...], preferred_element_type=jnp.float32)
    o_ref[...] = (acc + b_ref[...]).astype(o_ref.dtype)


def _round_up8(n):
    return ((n + 7) // 8) * 8


@jax.jit
def cifar_model_forward(xb, weight, bias):
    """xb: any float array whose total size is divisible by 1024 (NCHW CIFAR-like).
    weight: (10, 1024) torch-convention Linear weight. bias: (10,)."""
    # Glue: torch's xb.view(-1, 32*32) — row-major flatten/reshape (including the
    # module's "buggy" behavior where C>1 folds channels into extra rows).
    x2d = jnp.reshape(xb, (-1, INPUT_SIZE)).astype(jnp.float32)
    m = x2d.shape[0]

    # Row tile: multiple of 8 (f32 sublane), capped at TM_DEFAULT and at ~m/2 so
    # the grid has >= 2 blocks whenever m >= 16 (v7x megacore can split it).
    tm = min(TM_DEFAULT, _round_up8(max(8, m // 2)))
    grid = (pl.cdiv(m, tm),)   # no jnp.pad: last block overhangs and is masked

    # Lane-dense weight/bias: zero-pad N from 10 -> 128 once (fused under jit).
    w_p = jnp.zeros((INPUT_SIZE, N_PAD), jnp.float32).at[:, :NUM_CLASSES].set(
        weight.T.astype(jnp.float32))
    b_p = jnp.zeros((1, N_PAD), jnp.float32).at[:, :NUM_CLASSES].set(
        bias.astype(jnp.float32))

    # Advisory only; flops count the padded N=128.
    cost = pl.CostEstimate(
        flops=2 * m * INPUT_SIZE * N_PAD,
        transcendentals=0,
        bytes_accessed=(m * INPUT_SIZE * 4          # x read
                        + m * N_PAD * 4             # out write
                        + INPUT_SIZE * N_PAD * 4    # W read
                        + N_PAD * 4))               # bias read

    out = pl.pallas_call(
        _linear_kernel,
        out_shape=jax.ShapeDtypeStruct((m, N_PAD), jnp.float32),
        grid=grid,
        in_specs=[
            pl.BlockSpec((tm, INPUT_SIZE), lambda i: (i, 0)),      # streamed x tiles
            pl.BlockSpec((INPUT_SIZE, N_PAD), lambda i: (0, 0)),   # resident W
            pl.BlockSpec((1, N_PAD), lambda i: (0, 0)),            # resident bias
        ],
        out_specs=pl.BlockSpec((tm, N_PAD), lambda i: (i, 0)),
        compiler_params=pltpu.CompilerParams(
            dimension_semantics=("parallel",),          # independent M-tiles
            vmem_limit_bytes=32 * 1024 * 1024,          # safe on v7x's 64 MiB VMEM
        ),
        cost_estimate=cost,
    )(x2d, w_p, b_p)

    # Slice off the lane padding (fuses into consumers under jit).
    return out[:, :NUM_CLASSES]


def init_params(key):
    # Deterministic nn.Linear-style init: U(-1/sqrt(fan_in), 1/sqrt(fan_in)).
    k_w, k_b = jax.random.split(key)
    bound = 1.0 / jnp.sqrt(jnp.float32(INPUT_SIZE))
    weight = jax.random.uniform(
        k_w, (NUM_CLASSES, INPUT_SIZE), jnp.float32, -bound, bound)
    bias = jax.random.uniform(
        k_b, (NUM_CLASSES,), jnp.float32, -bound, bound)
    return weight, bias


if __name__ == "__main__":
    key = jax.random.PRNGKey(0)
    k_x, k_p = jax.random.split(key)

    # Small CIFAR-like batch: NCHW (2, 3, 32, 32). The module's view(-1, 1024)
    # turns this into 6 rows of 1024 — reproduced exactly (including the
    # channel-folding behavior of the original code).
    x = jax.random.normal(k_x, (2, 3, 32, 32), jnp.float32)
    weight, bias = init_params(k_p)

    out = cifar_model_forward(x, weight, bias)
    out = jax.block_until_ready(out)

    # Reference check in plain JAX.
    ref = jnp.reshape(x, (-1, INPUT_SIZE)) @ weight.T + bias
    assert out.shape == (6, NUM_CLASSES), out.shape
    assert jnp.allclose(out, ref, atol=1e-4, rtol=1e-4)

    print("KERNEL_OK")
</pallas_src>

<mosaic_0001>
module attributes {stable_mosaic.version = 11 : i64} {
  func.func @_linear_kernel(%arg0: i32, %arg1: memref<8x1024xf32, #tpu.memory_space<vmem>>, %arg2: memref<1024x128xf32, #tpu.memory_space<vmem>>, %arg3: memref<1x128xf32, #tpu.memory_space<vmem>>, %arg4: memref<8x128xf32, #tpu.memory_space<vmem>>) attributes {dimension_semantics = [#tpu.dimension_semantics<parallel>], iteration_bounds = array<i64: 1>, scalar_prefetch = 0 : i64, scratch_operands = 0 : i64, tpu.core_type = #tpu.core_type<tc>, window_params = [{transform_indices = @transform_0, window_bounds = array<i64: 8, 1024>}, {pipeline_mode = #tpu.pipeline_mode<synchronous>, transform_indices = @transform_1, window_bounds = array<i64: 1024, 128>}, {pipeline_mode = #tpu.pipeline_mode<synchronous>, transform_indices = @transform_2, window_bounds = array<i64: 1, 128>}, {transform_indices = @transform_3, window_bounds = array<i64: 8, 128>}]} {
    %c0 = arith.constant 0 : index
    %c0_0 = arith.constant 0 : index
    %0 = vector.load %arg1[%c0, %c0_0] : memref<8x1024xf32, #tpu.memory_space<vmem>>, vector<8x1024xf32>
    %c0_1 = arith.constant 0 : index
    %c0_2 = arith.constant 0 : index
    %1 = vector.load %arg2[%c0_1, %c0_2] : memref<1024x128xf32, #tpu.memory_space<vmem>>, vector<1024x128xf32>
    %cst = arith.constant dense<0.000000e+00> : vector<8x128xf32>
    %2 = tpu.matmul %0, %1, %cst {dimension_numbers = #tpu.dot_dimension_numbers<[1], [0], [0], [1], [0, 0, 1, 1], [], []>} : vector<8x1024xf32>, vector<1024x128xf32>, vector<8x128xf32> -> vector<8x128xf32>
    %c0_3 = arith.constant 0 : index
    %c0_4 = arith.constant 0 : index
    %3 = vector.load %arg3[%c0_3, %c0_4] : memref<1x128xf32, #tpu.memory_space<vmem>>, vector<1x128xf32>
    %4 = vector.broadcast %3 : vector<1x128xf32> to vector<8x128xf32>
    %5 = arith.addf %2, %4 : vector<8x128xf32>
    %c0_5 = arith.constant 0 : index
    %c0_6 = arith.constant 0 : index
    %6 = vector.load %arg4[%c0_5, %c0_6] : memref<8x128xf32, #tpu.memory_space<vmem>>, vector<8x128xf32>
    tpu.vector_store %arg4[%c0_5, %c0_6], %5 {strides = array<i32>} : memref<8x128xf32, #tpu.memory_space<vmem>>, vector<8x128xf32>,
    return
  }
  func.func @transform_0(%arg0: i32) -> (i32, i32) {
    %c0_i32 = arith.constant 0 : i32
    %c0_i32_0 = arith.constant 0 : i32
    return %arg0, %c0_i32 : i32, i32
  }
  func.func @transform_1(%arg0: i32) -> (i32, i32) {
    %c0_i32 = arith.constant 0 : i32
    %c0_i32_0 = arith.constant 0 : i32
    %c0_i32_1 = arith.constant 0 : i32
    return %c0_i32, %c0_i32_0 : i32, i32
  }
  func.func @transform_2(%arg0: i32) -> (i32, i32) {
    %c0_i32 = arith.constant 0 : i32
    %c0_i32_0 = arith.constant 0 : i32
    %c0_i32_1 = arith.constant 0 : i32
    return %c0_i32, %c0_i32_0 : i32, i32
  }
  func.func @transform_3(%arg0: i32) -> (i32, i32) {
    %c0_i32 = arith.constant 0 : i32
    %c0_i32_0 = arith.constant 0 : i32
    return %arg0, %c0_i32 : i32, i32
  }
}

</mosaic_0001>

<bundles_post_ra>
// kernel: cifar_model_forward.1
= control target key start
LH: loop header
LB: loop body
LE: loop exit
PB: predicated region body
PF: predicated region fallthrough
CT: control target
= control target key end

     0   :  { %s1052_s0 = inlined_call_operand.vmem [shape: f32[6,1024], index: 0, kind: input, shape index: {}]   ;;  %s1053_s1 = inlined_call_operand.vmem [shape: f32[1024,128], index: 1, kind: input, shape index: {}]   ;;  %s1054_s2 = inlined_call_operand.vmem [shape: f32[1,128], index: 2, kind: input, shape index: {}]   ;;  %s1055_s3 = inlined_call_operand.hbm [shape: f32[6,128], index: 3, kind: output, shape index: {}]  }
   0x1   :  { %v54_v0 = vld [vmem:[%s1053_s1 + $0xf8] sm:$0xff]  ;;  %v53_v4 = vld [vmem:[%s1053_s1 + $0xf0] sm:$0xff]  ;;  %v52_v8 = vld [vmem:[%s1053_s1 + $0xe8] sm:$0xff] }
   0x2   :  { %v86_v1 = vld [vmem:[%s1053_s1 + $0x1f8] sm:$0xff]  ;;  %454 = vmatprep.subr.mxu0 %v54_v0  ;;  %v85_v5 = vld [vmem:[%s1053_s1 + $0x1f0] sm:$0xff]  ;;  %v84_v9 = vld [vmem:[%s1053_s1 + $0x1e8] sm:$0xff] }
   0x3   :  { %v38_v2 = vld [vmem:[%s1053_s1 + $0x78] sm:$0xff]  ;;  %489 = vmatprep.subr.mxu1 %v86_v1  ;;  %v37_v6 = vld [vmem:[%s1053_s1 + $0x70] sm:$0xff]  ;;  %v36_v10 = vld [vmem:[%s1053_s1 + $0x68] sm:$0xff] }
   0x4   :  { %v70_v3 = vld [vmem:[%s1053_s1 + $0x178] sm:$0xff]  ;;  %455 = vmatpush3.msra.mxu0 %v38_v2  ;;  %v69_v7 = vld [vmem:[%s1053_s1 + $0x170] sm:$0xff]  ;;  %v68_v11 = vld [vmem:[%s1053_s1 + $0x168] sm:$0xff] }
   0x5   :  { %490 = vmatpush3.msra.mxu1 %v70_v3  ;;  %456 = vmatprep.subr.mxu0 %v53_v4  ;;  %v51_v12 = vld [vmem:[%s1053_s1 + $0xe0] sm:$0xff]  ;;  %v50_v16 = vld [vmem:[%s1053_s1 + $0xd8] sm:$0xff]  ;;  %v49_v20 = vld [vmem:[%s1053_s1 + $0xd0] sm:$0xff] }
   0x6   :  { %491 = vmatprep.subr.mxu1 %v85_v5  ;;  %457 = vmatpush3.msra.mxu0 %v37_v6  ;;  %v83_v13 = vld [vmem:[%s1053_s1 + $0x1e0] sm:$0xff]  ;;  %v82_v17 = vld [vmem:[%s1053_s1 + $0x1d8] sm:$0xff]  ;;  %v81_v21 = vld [vmem:[%s1053_s1 + $0x1d0] sm:$0xff] }
   0x7   :  { %492 = vmatpush3.msra.mxu1 %v69_v7  ;;  %458 = vmatprep.subr.mxu0 %v52_v8  ;;  %v35_v14 = vld [vmem:[%s1053_s1 + $0x60] sm:$0xff]  ;;  %v34_v18 = vld [vmem:[%s1053_s1 + $0x58] sm:$0xff]  ;;  %v33_v22 = vld [vmem:[%s1053_s1 + $0x50] sm:$0xff] }
   0x8   :  { %493 = vmatprep.subr.mxu1 %v84_v9  ;;  %v67_v15 = vld [vmem:[%s1053_s1 + $0x160] sm:$0xff]  ;;  %459 = vmatpush3.msra.mxu0 %v36_v10  ;;  %v66_v19 = vld [vmem:[%s1053_s1 + $0x158] sm:$0xff]  ;;  %v65_v23 = vld [vmem:[%s1053_s1 + $0x150] sm:$0xff] }
   0x9   :  { %494 = vmatpush3.msra.mxu1 %v68_v11  ;;  %460 = vmatprep.subr.mxu0 %v51_v12  ;;  %v48_v24 = vld [vmem:[%s1053_s1 + $0xc8] sm:$0xff]  ;;  %v47_v28 = vld [vmem:[%s1053_s1 + $0xc0] sm:$0xff]  ;;  %v46_v32 = vld [vmem:[%s1053_s1 + $0xb8] sm:$0xff] }
   0xa   :  { %495 = vmatprep.subr.mxu1 %v83_v13  ;;  %461 = vmatpush3.msra.mxu0 %v35_v14  ;;  %v80_v25 = vld [vmem:[%s1053_s1 + $0x1c8] sm:$0xff]  ;;  %v79_v29 = vld [vmem:[%s1053_s1 + $0x1c0] sm:$0xff]  ;;  %v78_v33 = vld [vmem:[%s1053_s1 + $0x1b8] sm:$0xff] }
   0xb   :  { %496 = vmatpush3.msra.mxu1 %v67_v15  ;;  %462 = vmatprep.subr.mxu0 %v50_v16  ;;  %v32_v26 = vld [vmem:[%s1053_s1 + $0x48] sm:$0xff]  ;;  %v31_v30 = vld [vmem:[%s1053_s1 + $0x40] sm:$0xff]  ;;  %v30_v34 = vld [vmem:[%s1053_s1 + $0x38] sm:$0xff] }
   0xc   :  { %497 = vmatprep.subr.mxu1 %v82_v17  ;;  %463 = vmatpush3.msra.mxu0 %v34_v18  ;;  %v64_v27 = vld [vmem:[%s1053_s1 + $0x148] sm:$0xff]  ;;  %v63_v31 = vld [vmem:[%s1053_s1 + $0x140] sm:$0xff]  ;;  %v62_v35 = vld [vmem:[%s1053_s1 + $0x138] sm:$0xff] }
   0xd   :  { %498 = vmatpush3.msra.mxu1 %v66_v19  ;;  %464 = vmatprep.subr.mxu0 %v49_v20  ;;  %v45_v36 = vld [vmem:[%s1053_s1 + $0xb0] sm:$0xff]  ;;  %v44_v40 = vld [vmem:[%s1053_s1 + $0xa8] sm:$0xff]  ;;  %v43_v44 = vld [vmem:[%s1053_s1 + $0xa0] sm:$0xff] }
   0xe   :  { %499 = vmatprep.subr.mxu1 %v81_v21  ;;  %465 = vmatpush3.msra.mxu0 %v33_v22  ;;  %v77_v37 = vld [vmem:[%s1053_s1 + $0x1b0] sm:$0xff]  ;;  %v76_v41 = vld [vmem:[%s1053_s1 + $0x1a8] sm:$0xff]  ;;  %v75_v45 = vld [vmem:[%s1053_s1 + $0x1a0] sm:$0xff] }
   0xf   :  { %500 = vmatpush3.msra.mxu1 %v65_v23  ;;  %466 = vmatprep.subr.mxu0 %v48_v24  ;;  %v29_v38 = vld [vmem:[%s1053_s1 + $0x30] sm:$0xff]  ;;  %v28_v42 = vld [vmem:[%s1053_s1 + $0x28] sm:$0xff]  ;;  %v27_v46 = vld [vmem:[%s1053_s1 + $0x20] sm:$0xff] }
  0x10   :  { %501 = vmatprep.subr.mxu1 %v80_v25  ;;  %467 = vmatpush3.msra.mxu0 %v32_v26  ;;  %v61_v39 = vld [vmem:[%s1053_s1 + $0x130] sm:$0xff]  ;;  %v60_v43 = vld [vmem:[%s1053_s1 + $0x128] sm:$0xff]  ;;  %v59_v47 = vld [vmem:[%s1053_s1 + $0x120] sm:$0xff] }
  0x11   :  { %502 = vmatpush3.msra.mxu1 %v64_v27  ;;  %468 = vmatprep.subr.mxu0 %v47_v28  ;;  %v42_v48 = vld [vmem:[%s1053_s1 + $0x98] sm:$0xff]  ;;  %v41_v52 = vld [vmem:[%s1053_s1 + $0x90] sm:$0xff]  ;;  %v40_v56 = vld [vmem:[%s1053_s1 + $0x88] sm:$0xff] }
  0x12   :  { %503 = vmatprep.subr.mxu1 %v79_v29  ;;  %469 = vmatpush3.msra.mxu0 %v31_v30  ;;  %v74_v49 = vld [vmem:[%s1053_s1 + $0x198] sm:$0xff]  ;;  %v73_v53 = vld [vmem:[%s1053_s1 + $0x190] sm:$0xff]  ;;  %v72_v57 = vld [vmem:[%s1053_s1 + $0x188] sm:$0xff] }
  0x13   :  { %504 = vmatpush3.msra.mxu1 %v63_v31  ;;  %470 = vmatprep.subr.mxu0 %v46_v32  ;;  %v26_v50 = vld [vmem:[%s1053_s1 + $0x18] sm:$0xff]  ;;  %v25_v54 = vld [vmem:[%s1053_s1 + $0x10] sm:$0xff]  ;;  %v24_v58 = vld [vmem:[%s1053_s1 + $0x8] sm:$0xff] }
  0x14   :  { %505 = vmatprep.subr.mxu1 %v78_v33  ;;  %471 = vmatpush3.msra.mxu0 %v30_v34  ;;  %v58_v51 = vld [vmem:[%s1053_s1 + $0x118] sm:$0xff]  ;;  %v57_v55 = vld [vmem:[%s1053_s1 + $0x110] sm:$0xff]  ;;  %v56_v59 = vld [vmem:[%s1053_s1 + $0x108] sm:$0xff] }
  0x15   :  { %506 = vmatpush3.msra.mxu1 %v62_v35  ;;  %472 = vmatprep.subr.mxu0 %v45_v36  ;;  %v39_v60 = vld [vmem:[%s1053_s1 + $0x80] sm:$0xff]  ;;  %v16_v63 = vld [vmem:[%s1052_s0 + $0x8] sm:$0xff]  ;;  %v18_v2 = vld [vmem:[%s1052_s0 + $0x18] sm:$0xff] }
  0x16   :  { %507 = vmatprep.subr.mxu1 %v77_v37  ;;  %473 = vmatpush3.msra.mxu0 %v29_v38  ;;  %v71_v61 = vld [vmem:[%s1053_s1 + $0x180] sm:$0xff]  ;;  %v118_v3 = vld [vmem:[%s1053_s1 + $0x2f8] sm:$0xff]  ;;  %v17_v5 = vld [vmem:[%s1052_s0 + $0x10] sm:$0xff] }
  0x17   :  { %508 = vmatpush3.msra.mxu1 %v61_v39  ;;  %474 = vmatprep.subr.mxu0 %v44_v40  ;;  %v23_v62 = vld [vmem:[%s1053_s1] sm:$0xff]  ;;  %v150_v4 = vld [vmem:[%s1053_s1 + $0x3f8] sm:$0xff]  ;;  %v117_v8 = vld [vmem:[%s1053_s1 + $0x2f0] sm:$0xff] }
  0x18   :  { %509 = vmatprep.subr.mxu1 %v76_v41  ;;  %475 = vmatpush3.msra.mxu0 %v28_v42  ;;  %v55_v0 = vld [vmem:[%s1053_s1 + $0x100] sm:$0xff]  ;;  %v102_v6 = vld [vmem:[%s1053_s1 + $0x278] sm:$0xff]  ;;  %v149_v9 = vld [vmem:[%s1053_s1 + $0x3f0] sm:$0xff] }
  0x19   :  { %510 = vmatpush3.msra.mxu1 %v60_v43  ;;  %476 = vmatprep.subr.mxu0 %v43_v44  ;;  %v15_v1 = vld [vmem:[%s1052_s0] sm:$0xff]  ;;  %v134_v7 = vld [vmem:[%s1053_s1 + $0x378] sm:$0xff]  ;;  %v101_v10 = vld [vmem:[%s1053_s1 + $0x270] sm:$0xff] }
  0x1a   :  { %511 = vmatprep.subr.mxu1 %v75_v45  ;;  %477 = vmatpush3.msra.mxu0 %v27_v46  ;;  %v133_v11 = vld [vmem:[%s1053_s1 + $0x370] sm:$0xff]  ;;  %v116_v12 = vld [vmem:[%s1053_s1 + $0x2e8] sm:$0xff]  ;;  %v115_v16 = vld [vmem:[%s1053_s1 + $0x2e0] sm:$0xff] }
  0x1b   :  { %512 = vmatpush3.msra.mxu1 %v59_v47  ;;  %478 = vmatprep.subr.mxu0 %v42_v48  ;;  %v148_v13 = vld [vmem:[%s1053_s1 + $0x3e8] sm:$0xff]  ;;  %v147_v17 = vld [vmem:[%s1053_s1 + $0x3e0] sm:$0xff]  ;;  %v114_v20 = vld [vmem:[%s1053_s1 + $0x2d8] sm:$0xff] }
  0x1c   :  { %513 = vmatprep.subr.mxu1 %v74_v49  ;;  %479 = vmatpush3.msra.mxu0 %v26_v50  ;;  %v100_v14 = vld [vmem:[%s1053_s1 + $0x268] sm:$0xff]  ;;  %v99_v18 = vld [vmem:[%s1053_s1 + $0x260] sm:$0xff]  ;;  %v146_v21 = vld [vmem:[%s1053_s1 + $0x3d8] sm:$0xff] }
  0x1d   :  { %514 = vmatpush3.msra.mxu1 %v58_v51  ;;  %480 = vmatprep.subr.mxu0 %v41_v52  ;;  %v132_v15 = vld [vmem:[%s1053_s1 + $0x368] sm:$0xff]  ;;  %v131_v19 = vld [vmem:[%s1053_s1 + $0x360] sm:$0xff]  ;;  %v98_v22 = vld [vmem:[%s1053_s1 + $0x258] sm:$0xff] }
  0x1e   :  { %515 = vmatprep.subr.mxu1 %v73_v53  ;;  %481 = vmatpush3.msra.mxu0 %v25_v54  ;;  %v130_v23 = vld [vmem:[%s1053_s1 + $0x358] sm:$0xff]  ;;  %v113_v24 = vld [vmem:[%s1053_s1 + $0x2d0] sm:$0xff]  ;;  %v112_v28 = vld [vmem:[%s1053_s1 + $0x2c8] sm:$0xff] }
  0x1f   :  { %516 = vmatpush3.msra.mxu1 %v57_v55  ;;  %482 = vmatprep.subr.mxu0 %v40_v56  ;;  %v145_v25 = vld [vmem:[%s1053_s1 + $0x3d0] sm:$0xff]  ;;  %v144_v29 = vld [vmem:[%s1053_s1 + $0x3c8] sm:$0xff] }
  0x20   :  { %517 = vmatprep.subr.mxu1 %v72_v57  ;;  %483 = vmatpush3.msra.mxu0 %v24_v58  ;;  %v97_v26 = vld [vmem:[%s1053_s1 + $0x250] sm:$0xff]  ;;  %v96_v30 = vld [vmem:[%s1053_s1 + $0x248] sm:$0xff] }
  0x21   :  { %518 = vmatpush3.msra.mxu1 %v56_v59  ;;  %484 = vmatprep.subr.mxu0 %v39_v60  ;;  %v129_v27 = vld [vmem:[%s1053_s1 + $0x350] sm:$0xff]  ;;  %v128_v31 = vld [vmem:[%s1053_s1 + $0x348] sm:$0xff] }
  0x22   :  { %519 = vmatprep.subr.mxu1 %v71_v61  ;;  %485 = vmatpush3.msra.mxu0 %v23_v62 }
  0x23   :  { %222 = vmatprep.mubr.f32.mxu0 %v16_v63  ;;  %520 = vmatpush3.msra.mxu1 %v55_v0 }
  0x24   :  { %223 = vmatmul.mubr.f32.vlgmr.msra.gmra.mxu0 %v15_v1  ;;  %292 = vmatprep.mubr.f32.mxu1 %v18_v2 }
  0x25   :  { %524 = vmatprep.subr.mxu0 %v118_v3  ;;  %559 = vmatprep.subr.mxu1 %v150_v4 }
  0x26   :  { %293 = vmatmul.mubr.f32.vlgmr.msra.gmra.mxu1 %v17_v5  ;;  %525 = vmatpush3.msra.mxu0 %v102_v6 }
  0x27   :  { %560 = vmatpush3.msra.mxu1 %v134_v7  ;;  %526 = vmatprep.subr.mxu0 %v117_v8 }
  0x28   :  { %561 = vmatprep.subr.mxu1 %v149_v9  ;;  %527 = vmatpush3.msra.mxu0 %v101_v10 }
  0x29   :  { %562 = vmatpush3.msra.mxu1 %v133_v11  ;;  %528 = vmatprep.subr.mxu0 %v116_v12 }
  0x2a   :  { %563 = vmatprep.subr.mxu1 %v148_v13  ;;  %529 = vmatpush3.msra.mxu0 %v100_v14 }
  0x2b   :  { %564 = vmatpush3.msra.mxu1 %v132_v15  ;;  %530 = vmatprep.subr.mxu0 %v115_v16 }
  0x2c   :  { %565 = vmatprep.subr.mxu1 %v147_v17  ;;  %531 = vmatpush3.msra.mxu0 %v99_v18 }
  0x2d   :  { %566 = vmatpush3.msra.mxu1 %v131_v19  ;;  %532 = vmatprep.subr.mxu0 %v114_v20 }
  0x2e   :  { %567 = vmatprep.subr.mxu1 %v146_v21  ;;  %533 = vmatpush3.msra.mxu0 %v98_v22 }
  0x2f   :  { %568 = vmatpush3.msra.mxu1 %v130_v23  ;;  %534 = vmatprep.subr.mxu0 %v113_v24 }
  0x30   :  { %569 = vmatprep.subr.mxu1 %v145_v25 }
  0x31   :  { %8 = vsyncpa [#allocation3], 0  ;;  %535 = vmatpush3.msra.mxu0 %v97_v26  ;;  %570 = vmatpush3.msra.mxu1 %v129_v27  ;;  %v111_v32 = vld [vmem:[%s1053_s1 + $0x2c0] sm:$0xff]  ;;  %v110_v36 = vld [vmem:[%s1053_s1 + $0x2b8] sm:$0xff] }
  0x32   :  { %v143_v33 = vld [vmem:[%s1053_s1 + $0x3c0] sm:$0xff]  ;;  %536 = vmatprep.subr.mxu0 %v112_v28  ;;  %571 = vmatprep.subr.mxu1 %v144_v29  ;;  %v142_v37 = vld [vmem:[%s1053_s1 + $0x3b8] sm:$0xff]  ;;  %v109_v40 = vld [vmem:[%s1053_s1 + $0x2b0] sm:$0xff] }
  0x33   :  { %v95_v34 = vld [vmem:[%s1053_s1 + $0x240] sm:$0xff]  ;;  %537 = vmatpush3.msra.mxu0 %v96_v30  ;;  %572 = vmatpush3.msra.mxu1 %v128_v31  ;;  %v94_v38 = vld [vmem:[%s1053_s1 + $0x238] sm:$0xff]  ;;  %v141_v41 = vld [vmem:[%s1053_s1 + $0x3b0] sm:$0xff] }
  0x34   :  { %v127_v35 = vld [vmem:[%s1053_s1 + $0x340] sm:$0xff]  ;;  %538 = vmatprep.subr.mxu0 %v111_v32  ;;  %573 = vmatprep.subr.mxu1 %v143_v33  ;;  %v126_v39 = vld [vmem:[%s1053_s1 + $0x338] sm:$0xff]  ;;  %v93_v42 = vld [vmem:[%s1053_s1 + $0x230] sm:$0xff] }
  0x35   :  { %539 = vmatpush3.msra.mxu0 %v95_v34  ;;  %574 = vmatpush3.msra.mxu1 %v127_v35  ;;  %v125_v43 = vld [vmem:[%s1053_s1 + $0x330] sm:$0xff]  ;;  %v108_v44 = vld [vmem:[%s1053_s1 + $0x2a8] sm:$0xff]  ;;  %v107_v48 = vld [vmem:[%s1053_s1 + $0x2a0] sm:$0xff] }
  0x36   :  { %540 = vmatprep.subr.mxu0 %v110_v36  ;;  %575 = vmatprep.subr.mxu1 %v142_v37  ;;  %v140_v45 = vld [vmem:[%s1053_s1 + $0x3a8] sm:$0xff]  ;;  %v139_v49 = vld [vmem:[%s1053_s1 + $0x3a0] sm:$0xff]  ;;  %v106_v52 = vld [vmem:[%s1053_s1 + $0x298] sm:$0xff] }
  0x37   :  { %541 = vmatpush3.msra.mxu0 %v94_v38  ;;  %576 = vmatpush3.msra.mxu1 %v126_v39  ;;  %v92_v46 = vld [vmem:[%s1053_s1 + $0x228] sm:$0xff]  ;;  %v91_v50 = vld [vmem:[%s1053_s1 + $0x220] sm:$0xff]  ;;  %v138_v53 = vld [vmem:[%s1053_s1 + $0x398] sm:$0xff] }
  0x38   :  { %542 = vmatprep.subr.mxu0 %v109_v40  ;;  %577 = vmatprep.subr.mxu1 %v141_v41  ;;  %v124_v47 = vld [vmem:[%s1053_s1 + $0x328] sm:$0xff]  ;;  %v123_v51 = vld [vmem:[%s1053_s1 + $0x320] sm:$0xff]  ;;  %v90_v54 = vld [vmem:[%s1053_s1 + $0x218] sm:$0xff] }
  0x39   :  { %543 = vmatpush3.msra.mxu0 %v93_v42  ;;  %578 = vmatpush3.msra.mxu1 %v125_v43  ;;  %v122_v55 = vld [vmem:[%s1053_s1 + $0x318] sm:$0xff]  ;;  %v105_v56 = vld [vmem:[%s1053_s1 + $0x290] sm:$0xff]  ;;  %v104_v60 = vld [vmem:[%s1053_s1 + $0x288] sm:$0xff] }
  0x3a   :  { %544 = vmatprep.subr.mxu0 %v108_v44  ;;  %579 = vmatprep.subr.mxu1 %v140_v45  ;;  %v137_v57 = vld [vmem:[%s1053_s1 + $0x390] sm:$0xff]  ;;  %v136_v61 = vld [vmem:[%s1053_s1 + $0x388] sm:$0xff]  ;;  %v103_v0 = vld [vmem:[%s1053_s1 + $0x280] sm:$0xff] }
  0x3b   :  { %545 = vmatpush3.msra.mxu0 %v92_v46  ;;  %580 = vmatpush3.msra.mxu1 %v124_v47  ;;  %v89_v58 = vld [vmem:[%s1053_s1 + $0x210] sm:$0xff]  ;;  %v88_v62 = vld [vmem:[%s1053_s1 + $0x208] sm:$0xff]  ;;  %v135_v1 = vld [vmem:[%s1053_s1 + $0x380] sm:$0xff] }
  0x3c   :  { %546 = vmatprep.subr.mxu0 %v107_v48  ;;  %581 = vmatprep.subr.mxu1 %v139_v49  ;;  %v121_v59 = vld [vmem:[%s1053_s1 + $0x310] sm:$0xff]  ;;  %v120_v63 = vld [vmem:[%s1053_s1 + $0x308] sm:$0xff]  ;;  %v87_v2 = vld [vmem:[%s1053_s1 + $0x200] sm:$0xff] }
  0x3d   :  { %547 = vmatpush3.msra.mxu0 %v91_v50  ;;  %582 = vmatpush3.msra.mxu1 %v123_v51  ;;  %v20_v3 = vld [vmem:[%s1052_s0 + $0x28] sm:$0xff]  ;;  %v119_v4 = vld [vmem:[%s1053_s1 + $0x300] sm:$0xff]  ;;  %v22_v5 = vld [vmem:[%s1052_s0 + $0x38] sm:$0xff] }
  0x3e   :  { %548 = vmatprep.subr.mxu0 %v106_v52  ;;  %583 = vmatprep.subr.mxu1 %v138_v53  ;;  %v19_v6 = vld [vmem:[%s1052_s0 + $0x20] sm:$0xff]  ;;  %v21_v7 = vld [vmem:[%s1052_s0 + $0x30] sm:$0xff]  ;;  %s617_s0 = smov [#allocation2]  }
  0x3f   :  { %549 = vmatpush3.msra.mxu0 %v90_v54  ;;  %584 = vmatpush3.msra.mxu1 %v122_v55  ;;  %v453_v12 = vld [vmem:[%s1054_s2] ss:$0 sm:$0xff]  ;;  %s445_s15 = sshll.u32 %s617_s0, 4  ;;  %s446_s15 = int_to_ptr.vmem [resolvable:$true] %s445_s15 }
  0x40   :  { %550 = vmatprep.subr.mxu0 %v105_v56  ;;  %585 = vmatprep.subr.mxu1 %v137_v57  ;;  %s595_s16 = scalar_lea.vmem %s446_s15, 128  ;;  %p600_p1 = scmp.lt.s32.totalorder %s446_s15, %s446_s15 }
  0x41   :  { %551 = vmatpush3.msra.mxu0 %v89_v58  ;;  %586 = vmatpush3.msra.mxu1 %v121_v59  ;;  %p596_p0 = scmp.ne.s32.totalorder %s446_s15, %s595_s16  ;;  %p601_p2 = scmp.lt.s32.totalorder %s595_s16, %s595_s16 }
  0x42   :  { %552 = vmatprep.subr.mxu0 %v104_v60  ;;  %587 = vmatprep.subr.mxu1 %v136_v61 }
  0x43   :  { %553 = vmatpush3.msra.mxu0 %v88_v62  ;;  %588 = vmatpush3.msra.mxu1 %v120_v63  ;;  %p602_p3 = por %p601_p2, %p600_p1 }
  0x44   :  { %554 = vmatprep.subr.mxu0 %v103_v0  ;;  %589 = vmatprep.subr.mxu1 %v135_v1 }
  0x45   :  { %555 = vmatpush3.msra.mxu0 %v87_v2  ;;  %362 = vmatprep.mubr.f32.mxu0 %v20_v3  ;;  %p603_p4 = pnand %p602_p3, %p596_p0 }
  0x46   :  { %590 = vmatpush3.msra.mxu1 %v119_v4  ;;  %432 = vmatprep.mubr.f32.mxu1 %v22_v5 }
  0x47   :  { %363 = vmatmul.mubr.f32.vlgmr.msra.gmra.mxu0 %v19_v6  ;;  %433 = vmatmul.mubr.f32.vlgmr.msra.gmra.mxu1 %v21_v7 }
  0xe4   :  { %v486_v8 = vpop.f32.mrf.mxu0 }
  0xe6   :  { %v521_v9 = vpop.f32.mrf.mxu1  ;;  %v487_v10 = vpop.f32.mrf.mxu0 }
  0xe7   :  { %v488_v11 = vadd.f32 %v487_v10, %v486_v8 }
  0xe8   :  { %v522_v13 = vpop.f32.mrf.mxu1 }
  0xe9   :  { %v225_v14 = vadd.f32 %v488_v11, %v453_v12  ;;  %v523_v15 = vadd.f32 %v522_v13, %v521_v9 }
  0xeb   :  { %v295_v20 = vadd.f32 %v523_v15, %v225_v14 }
 0x107   :  { %v556_v16 = vpop.f32.mrf.mxu0  ;;  %v591_v17 = vpop.f32.mrf.mxu1 }
 0x109   :  { %v557_v18 = vpop.f32.mrf.mxu0  ;;  %v592_v19 = vpop.f32.mrf.mxu1 }
 0x10a   :  { %v558_v21 = vadd.f32 %v557_v18, %v556_v16  ;;  %v593_v23 = vadd.f32 %v592_v19, %v591_v17 }
 0x10c   :  { %v365_v22 = vadd.f32 %v558_v21, %v295_v20 }
 0x10e   :  { %v435_v24 = vadd.f32 %v593_v23, %v365_v22 }
 0x110   :  { %438 = vst [vmem:[#allocation2] sm:$0xff] %v435_v24 }
 0x111   :  { %606 = shalt.err (!%p603_p4)
}
 0x112   :  { %448 = dma.vmem_to_hbm [thread:$0]  %s446_s15, 128, %s1055_s3, [#allocation3]  }
 0x113   :  { %615 = dma.done.wait [#allocation3], 128  }
 0x114   :  { %616 = vsyncadd [#allocation3], 4294967168 }
 0x115   :  { %452 = vsyncpa [#allocation3], 1 }

</bundles_post_ra>
